<compile_context>
chip_gen: v7x
topology: tpu7x:2x2x1
jax: 0.10.0
libtpu: 0.0.40
codegen_flags: <defaults>
</compile_context>

<pallas_src>
import functools
import math

import jax
import jax.numpy as jnp
from jax.experimental import pallas as pl
from jax.experimental.pallas import tpu as pltpu


# ---------------------------------------------------------------------------
# pe buffer (analogue of the PyTorch registered buffer).  Built once, outside
# the hot path, in the compute dtype, shape (max_len, d_model).
# ---------------------------------------------------------------------------
def make_sinusoidal_pe(d_model: int, max_len: int = 5000, dtype=jnp.float32) -> jnp.ndarray:
    assert d_model % 2 == 0, "d_model must be even (same assumption as the PyTorch module)"
    position = jnp.arange(max_len, dtype=jnp.float32)[:, None]                    # (max_len, 1)
    div_term = jnp.exp(
        jnp.arange(0, d_model, 2, dtype=jnp.float32) * (-math.log(10000.0) / d_model)
    )                                                                              # (d_model//2,)
    angles = position * div_term                                                   # (max_len, d_model//2)
    pe = jnp.zeros((max_len, d_model), dtype=jnp.float32)
    pe = pe.at[:, 0::2].set(jnp.sin(angles))
    pe = pe.at[:, 1::2].set(jnp.cos(angles))
    return pe.astype(dtype)


# ---------------------------------------------------------------------------
# Kernels
# ---------------------------------------------------------------------------
def _pe_add_kernel_3d(x_ref, pe_ref, o_ref):
    # x_ref / o_ref: (ts, tb, D) tile;  pe_ref: (ts, D) tile broadcast over batch.
    o_ref[...] = (x_ref[...] + pe_ref[...][:, None, :]).astype(o_ref.dtype)


def _pe_add_kernel_2d(x_ref, pe_ref, o_ref):
    # Batch-squeezed path (B == 1): x_ref / pe_ref / o_ref are (ts, D).
    o_ref[...] = (x_ref[...] + pe_ref[...]).astype(o_ref.dtype)


# ---------------------------------------------------------------------------
# Device-derived defaults & tile sizing
# ---------------------------------------------------------------------------
def _round_down(v: int, m: int) -> int:
    return (v // m) * m


def _round_up(v: int, m: int) -> int:
    return -(-v // m) * m


def _tpu_vmem_defaults():
    """(per-core VMEM bytes, #TensorCores heuristic, default tile budget)."""
    cap = None
    try:
        info = pltpu.get_tpu_info()
        cap = int(getattr(info, "vmem_capacity_bytes", 0)) or None
    except Exception:
        cap = None
    if cap is None:
        cap = 64 * 1024 * 1024  # conservative fallback: v7x-sized per-TC VMEM
    # v7x (64 MiB per-TC VMEM) packs 2 TensorCores per chip; v5e/v6e have 1.
    num_tc = 2 if cap <= 64 * 1024 * 1024 else 1
    # Double-buffered working-set budget ~1/3 of per-core VMEM, clamped:
    #   v5e/v6e (128 MiB) -> ~43 MiB;  v7x (64 MiB) -> ~21 MiB (stays well
    #   inside 64 MiB with room for Mosaic internal scratch).
    budget = min(max(cap // 3, 16 * 1024 * 1024), 48 * 1024 * 1024)
    return cap, num_tc, budget


def _choose_tiles(S: int, B: int, D: int, itemsize: int, budget_bytes: int, num_tc: int):
    """Pick (seq_tile, batch_tile, slice_pe).

    Double-buffered VMEM footprint = 2 * ts * D * itemsize * (2*tb + 1)
    (x-in tile + out tile + pe tile, each double-buffered).
    """
    # Sublane packing of the compute dtype: 8 rows fp32, 16 bf16, 32 int8/fp8.
    pack = {4: 8, 2: 16, 1: 32}.get(itemsize, 8)
    min_step_bytes = 8 * 1024 * 1024  # keep the ~0.35us/step fixed cost in the noise

    def footprint(ts, tb):
        return 2 * ts * D * itemsize * (2 * tb + 1)

    def step_bytes(ts, tb):
        return ts * D * itemsize * (2 * tb + 1)

    # --- batch tile: full batch unless even a pack-row seq tile blows VMEM ---
    tb = B
    if B > pack and footprint(min(S, pack), B) > budget_bytes:
        approx = budget_bytes // (2 * min(S, pack) * D * itemsize)  # ~ (2*tb + 1)
        tb = min(B, max(pack, _round_down((approx - 1) // 2, pack)))
        # Each grid step still moves ~budget/2 bytes of HBM traffic because the
        # seq tile below is grown back up to the budget for this (smaller) tb.

    # --- seq tile: biggest pack-aligned tile (or full S) that fits the budget ---
    slice_pe = False
    if S < pack:
        # Tiny sequence: single full-S tile.  pe must then be exactly (S, D) so
        # its block equals the full array dims (sublane layout constraint);
        # the slice is negligible at this size.
        ts = S
        slice_pe = True
    elif S % pack == 0 and footprint(S, tb) <= budget_bytes:
        ts = S
    else:
        ts = budget_bytes // (2 * D * itemsize * (2 * tb + 1))
        ts = min(_round_down(S, pack), max(pack, _round_down(ts, pack)))

    # --- megacore (v7x): give each TensorCore >= 2 pipeline iterations ---
    if num_tc > 1 and S > pack:
        seq_steps = -(-S // ts)
        batch_steps = -(-B // tb)
        target_steps = 2 * num_tc
        if seq_steps * batch_steps < target_steps:
            want_seq = -(-target_steps // batch_steps)
            ts_new = max(pack, _round_up(-(-S // want_seq), pack))
            # Only split if each step still moves a useful amount of HBM traffic.
            if ts_new < ts and step_bytes(ts_new, tb) >= min_step_bytes // 4:
                ts = ts_new

    return ts, tb, slice_pe


# ---------------------------------------------------------------------------
# Forward
# ---------------------------------------------------------------------------
@functools.partial(jax.jit, static_argnames=("vmem_budget_bytes",))
def positional_encoding_forward(x: jnp.ndarray, pe: jnp.ndarray, *, vmem_budget_bytes=None):
    """out = x + pe[:S] broadcast over batch.

    x:  (S, B, D)
    pe: (max_len, D) (preferred, built by make_sinusoidal_pe in x.dtype) or the
        PyTorch-style (max_len, 1, D).
    """
    S, B, D = x.shape
    if pe.ndim == 3:                                  # tolerate (max_len, 1, D)
        pe = pe.reshape(pe.shape[0], pe.shape[2])
    assert pe.shape[1] == D and pe.shape[0] >= S
    if pe.dtype != x.dtype:
        # Fallback only; prefer building the buffer in x.dtype so no per-call
        # cast pass over HBM is needed.
        pe = pe.astype(x.dtype)

    itemsize = jnp.dtype(x.dtype).itemsize
    vmem_cap, num_tc, default_budget = _tpu_vmem_defaults()
    budget = int(vmem_budget_bytes) if vmem_budget_bytes else default_budget
    ts, tb, slice_pe = _choose_tiles(S, B, D, itemsize, budget, num_tc)

    if slice_pe:
        pe = pe[:S]  # tiny (S < sublane pack); lets the pe block equal full dims

    # Scoped-VMEM limit tied to the tile budget (+~25% headroom for Mosaic
    # internal scratch), capped below the physical per-core VMEM.
    vmem_limit = int(min(max(budget * 5 // 4, 32 * 1024 * 1024),
                         max(vmem_cap - (8 << 20), 32 * 1024 * 1024)))

    if B == 1:
        # Squeeze the size-1 batch dim so seq rows land on the sublane axis:
        # fully dense vregs/VMEM tiles and unmasked lane-dense stores, instead
        # of wasting 7/8 (fp32) or 15/16 (bf16) of every tile on one batch row.
        x2 = x.reshape(S, D)
        out2 = pl.pallas_call(
            _pe_add_kernel_2d,
            out_shape=jax.ShapeDtypeStruct((S, D), x.dtype),
            grid_spec=pltpu.PrefetchScalarGridSpec(
                num_scalar_prefetch=0,
                grid=(pl.cdiv(S, ts),),
                in_specs=[
                    pl.BlockSpec((ts, D), lambda i: (i, 0)),
                    pl.BlockSpec((ts, D), lambda i: (i, 0)),
                ],
                out_specs=pl.BlockSpec((ts, D), lambda i: (i, 0)),
            ),
            compiler_params=pltpu.CompilerParams(
                dimension_semantics=("parallel",),
                vmem_limit_bytes=vmem_limit,
            ),
        )(x2, pe)
        return out2.reshape(S, 1, D)

    # TODO(synk): for 2 <= B < sublane-pack the (ts, tb, D) block still wastes
    # sublanes on the batch axis; folding batch into seq would need in-kernel
    # sin/cos generation of pe, left out to keep lowering risk at zero.
    return pl.pallas_call(
        _pe_add_kernel_3d,
        out_shape=jax.ShapeDtypeStruct((S, B, D), x.dtype),
        grid_spec=pltpu.PrefetchScalarGridSpec(
            num_scalar_prefetch=0,
            grid=(pl.cdiv(S, ts), pl.cdiv(B, tb)),
            in_specs=[
                pl.BlockSpec((ts, tb, D), lambda i, j: (i, j, 0)),
                # pe's block index ignores the inner batch grid axis, so the
                # same pe tile is reused across batch tiles without re-DMA.
                pl.BlockSpec((ts, D), lambda i, j: (i, 0)),
            ],
            out_specs=pl.BlockSpec((ts, tb, D), lambda i, j: (i, j, 0)),
        ),
        compiler_params=pltpu.CompilerParams(
            dimension_semantics=("parallel", "parallel"),
            vmem_limit_bytes=vmem_limit,
        ),
    )(x, pe)


# ---------------------------------------------------------------------------
# Self-test
# ---------------------------------------------------------------------------
if __name__ == "__main__":
    key = jax.random.PRNGKey(0)
    k0, k1, k2 = jax.random.split(key, 3)
    max_len = 64

    # 1) Module-consistent small shapes: seq=8, batch=2, d_model=32 (fp32).
    S, B, D = 8, 2, 32
    x = jax.random.normal(k0, (S, B, D), dtype=jnp.float32)
    pe = make_sinusoidal_pe(D, max_len=max_len, dtype=jnp.float32)
    out = jax.block_until_ready(positional_encoding_forward(x, pe))
    ref = x + pe[:S][:, None, :]
    assert out.shape == (S, B, D)
    assert jnp.allclose(out, ref, atol=1e-6), "mismatch vs reference (f32)"

    # 2) bf16 with lane-dense D=128: exercises the 16-row sublane pack and the
    #    tiny-S pe-slice path (S < pack).
    S2, B2, D2 = 8, 2, 128
    x2 = jax.random.normal(k1, (S2, B2, D2), dtype=jnp.float32).astype(jnp.bfloat16)
    pe2 = make_sinusoidal_pe(D2, max_len=max_len, dtype=jnp.bfloat16)
    out2 = jax.block_until_ready(positional_encoding_forward(x2, pe2))
    ref2 = x2.astype(jnp.float32) + pe2[:S2].astype(jnp.float32)[:, None, :]
    assert out2.dtype == jnp.bfloat16
    assert jnp.allclose(out2.astype(jnp.float32), ref2, atol=2e-2), "mismatch vs reference (bf16)"

    # 3) B == 1 squeezed 2-D path with a non-multiple-of-8 sequence length
    #    (exercises the masked edge block).
    S3, B3, D3 = 10, 1, 128
    x3 = jax.random.normal(k2, (S3, B3, D3), dtype=jnp.float32)
    pe3 = make_sinusoidal_pe(D3, max_len=max_len, dtype=jnp.float32)
    out3 = jax.block_until_ready(positional_encoding_forward(x3, pe3))
    ref3 = x3 + pe3[:S3][:, None, :]
    assert out3.shape == (S3, B3, D3)
    assert jnp.allclose(out3, ref3, atol=1e-6), "mismatch vs reference (B=1 edge)"

    print("KERNEL_OK")
</pallas_src>

<mosaic_0001>
module attributes {stable_mosaic.version = 11 : i64} {
  func.func @_pe_add_kernel_3d(%arg0: i32, %arg1: i32, %arg2: memref<8x2x32xf32, #tpu.memory_space<vmem>>, %arg3: memref<8x32xf32, #tpu.memory_space<vmem>>, %arg4: memref<8x2x32xf32, #tpu.memory_space<vmem>>) attributes {dimension_semantics = [#tpu.dimension_semantics<parallel>, #tpu.dimension_semantics<parallel>], iteration_bounds = array<i64: 1, 1>, scalar_prefetch = 0 : i64, scratch_operands = 0 : i64, tpu.core_type = #tpu.core_type<tc>, window_params = [{transform_indices = @transform_0, window_bounds = array<i64: 8, 2, 32>}, {transform_indices = @transform_1, window_bounds = array<i64: 8, 32>}, {transform_indices = @transform_2, window_bounds = array<i64: 8, 2, 32>}]} {
    %c0 = arith.constant 0 : index
    %c0_0 = arith.constant 0 : index
    %c0_1 = arith.constant 0 : index
    %0 = vector.load %arg2[%c0, %c0_0, %c0_1] : memref<8x2x32xf32, #tpu.memory_space<vmem>>, vector<8x2x32xf32>
    %c0_2 = arith.constant 0 : index
    %c0_3 = arith.constant 0 : index
    %1 = vector.load %arg3[%c0_2, %c0_3] : memref<8x32xf32, #tpu.memory_space<vmem>>, vector<8x32xf32>
    %2 = vector.shape_cast %1 : vector<8x32xf32> to vector<8x1x32xf32>
    %3 = vector.broadcast %2 : vector<8x1x32xf32> to vector<8x2x32xf32>
    %4 = arith.addf %0, %3 : vector<8x2x32xf32>
    %c0_4 = arith.constant 0 : index
    %c0_5 = arith.constant 0 : index
    %c0_6 = arith.constant 0 : index
    %5 = vector.load %arg4[%c0_4, %c0_5, %c0_6] : memref<8x2x32xf32, #tpu.memory_space<vmem>>, vector<8x2x32xf32>
    tpu.vector_store %arg4[%c0_4, %c0_5, %c0_6], %4 {strides = array<i32>} : memref<8x2x32xf32, #tpu.memory_space<vmem>>, vector<8x2x32xf32>,
    return
  }
  func.func @transform_0(%arg0: i32, %arg1: i32) -> (i32, i32, i32) {
    %c0_i32 = arith.constant 0 : i32
    %c0_i32_0 = arith.constant 0 : i32
    return %arg0, %arg1, %c0_i32 : i32, i32, i32
  }
  func.func @transform_1(%arg0: i32, %arg1: i32) -> (i32, i32) {
    %c0_i32 = arith.constant 0 : i32
    %c0_i32_0 = arith.constant 0 : i32
    return %arg0, %c0_i32 : i32, i32
  }
  func.func @transform_2(%arg0: i32, %arg1: i32) -> (i32, i32, i32) {
    %c0_i32 = arith.constant 0 : i32
    %c0_i32_0 = arith.constant 0 : i32
    return %arg0, %arg1, %c0_i32 : i32, i32, i32
  }
}

</mosaic_0001>

<bundles_post_ra>
// kernel: positional_encoding_forward.1
= control target key start
LH: loop header
LB: loop body
LE: loop exit
PB: predicated region body
PF: predicated region fallthrough
CT: control target
= control target key end

     0   :  { %v26_v1 = vlaneseq  ;;  %v172_v2 = vmov 1966171168   ;;  %s238_s0 = inlined_call_operand.vmem [shape: f32[8,2,32], index: 0, kind: input, shape index: {}]   ;;  %s239_s1 = inlined_call_operand.vmem [shape: f32[64,32], index: 1, kind: input, shape index: {}]   ;;  %s240_s2 = inlined_call_operand.hbm [shape: f32[8,2,32], index: 2, kind: output, shape index: {}]  }
   0x1   :  { %v20_v0 = vld [vmem:[%s239_s1] sm:$0xff]  ;;  %v24_v3 = vunpack.c.l.s4 %v172_v2 }
   0x2   :  { %v27_v4 = vshrl.u32 %v26_v1, 7  ;;  %v22_v6 = vcombine.high %v20_v0, %v20_v0 }
   0x3   :  { %v25_v5 = vunpack.c.0.s8 %v24_v3 }
   0x4   :  { %7 = vsyncpa [#allocation3], 0  ;;  %v73_v9 = vsub.s32 0, %v27_v4  ;;  %v12_v15 = vld [vmem:[%s238_s0] sm:$0x3]  ;;  %vm119_vm0 = vcmask 254976  }
   0x5   :  { %v28_v7 = vsub.s32 %v25_v5, %v27_v4  ;;  %v16_v19 = vld [vmem:[%s238_s0 + $0x8] sm:$0x3]  ;;  %v13_v21 = vld [vmem:[%s238_s0 + $0x2] sm:$0x3]  ;;  %v14_v22 = vld [vmem:[%s238_s0 + $0x4] sm:$0x3] }
   0x6   :  { %v17_v29 = vld [vmem:[%s238_s0 + $0xa] sm:$0x3]  ;;  %v18_v30 = vld [vmem:[%s238_s0 + $0xc] sm:$0x3]  ;;  %v15_v31 = vld [vmem:[%s238_s0 + $0x6] sm:$0x3] }
   0x7   :  { %v29_v8 = vrot.slane %v20_v0, %v28_v7  ;;  %v36_v10 = vrot.slane %v22_v6, %v28_v7  ;;  %v19_v39 = vld [vmem:[%s238_s0 + $0xe] sm:$0x3]  ;;  %s173_s26 = smov [#allocation2]  }
   0x8   :  { %s133_s27 = sshll.u32 %s173_s26, 4  ;;  %s134_s27 = int_to_ptr.vmem [resolvable:$true] %s133_s27 }
   0x9   :  { %v45_v11 = vrot.slane %v29_v8, %v28_v7  ;;  %v37_v12 = vcombine.high %v29_v8, %v29_v8  ;;  %v52_v13 = vrot.slane %v36_v10, %v28_v7  ;;  %v38_v14 = vcombine.high %v36_v10, %v36_v10  ;;  %s148_s0 = scalar_lea.vmem %s134_s27, 256  ;;  %p153_p1 = scmp.lt.s32.totalorder %s134_s27, %s134_s27 }
   0xa   :  { %p149_p0 = scmp.ne.s32.totalorder %s134_s27, %s148_s0  ;;  %p154_p2 = scmp.lt.s32.totalorder %s148_s0, %s148_s0 }
   0xb   :  { %v74_v16 = vrot.slane %v45_v11, %v73_v9  ;;  %v59_v17 = vrot.slane %v37_v12, %v28_v7  ;;  %v67_v18 = vcombine.high %v45_v11, %v45_v11  ;;  %v90_v20 = vrot.slane %v52_v13, %v73_v9 }
   0xc   :  { %v66_v23 = vrot.slane %v38_v14, %v28_v7  ;;  %v68_v24 = vcombine.high %v52_v13, %v52_v13  ;;  %p155_p3 = por %p154_p2, %p153_p1 }
   0xd   :  { %v111_v25 = vadd.f32 %v74_v16, %v12_v15  ;;  %v78_v26 = vrot.slane %v59_v17, %v73_v9  ;;  %v82_v27 = vrot.slane %v67_v18, %v73_v9  ;;  %v69_v28 = vcombine.high %v59_v17, %v59_v17 }
   0xe   :  { %v115_v32 = vadd.f32 %v90_v20, %v16_v19  ;;  %v94_v33 = vrot.slane %v66_v23, %v73_v9  ;;  %v98_v34 = vrot.slane %v68_v24, %v73_v9  ;;  %v70_v35 = vcombine.high %v66_v23, %v66_v23  ;;  %p156_p4 = pnand %p155_p3, %p149_p0 }
   0xf   :  { %120 = vst.msk [vmem:[#allocation2] sm:$0x3] %vm119_vm0, %v111_v25  ;;  %v112_v36 = vadd.f32 %v78_v26, %v13_v21  ;;  %v113_v37 = vadd.f32 %v82_v27, %v14_v22  ;;  %v86_v38 = vrot.slane %v69_v28, %v73_v9 }
  0x10   :  { %124 = vst.msk [vmem:[#allocation2 + $0x8] sm:$0x3] %vm119_vm0, %v115_v32  ;;  %v116_v40 = vadd.f32 %v94_v33, %v17_v29  ;;  %v117_v41 = vadd.f32 %v98_v34, %v18_v30  ;;  %v102_v42 = vrot.slane %v70_v35, %v73_v9 }
  0x11   :  { %121 = vst.msk [vmem:[#allocation2 + $0x2] sm:$0x3] %vm119_vm0, %v112_v36  ;;  %122 = vst.msk [vmem:[#allocation2 + $0x4] sm:$0x3] %vm119_vm0, %v113_v37  ;;  %v114_v43 = vadd.f32 %v86_v38, %v15_v31 }
  0x12   :  { %125 = vst.msk [vmem:[#allocation2 + $0xa] sm:$0x3] %vm119_vm0, %v116_v40  ;;  %126 = vst.msk [vmem:[#allocation2 + $0xc] sm:$0x3] %vm119_vm0, %v117_v41  ;;  %v118_v44 = vadd.f32 %v102_v42, %v19_v39 }
  0x13   :  { %123 = vst.msk [vmem:[#allocation2 + $0x6] sm:$0x3] %vm119_vm0, %v114_v43 }
  0x14   :  { %127 = vst.msk [vmem:[#allocation2 + $0xe] sm:$0x3] %vm119_vm0, %v118_v44 }
  0x15   :  { %159 = shalt.err (!%p156_p4)
}
  0x16   :  { %s160_s30 = scalar_lea.hbm %s240_s2, 256 }
  0x17   :  { %p161_p5 = scmp.ne.s32.totalorder %s240_s2, %s160_s30  ;;  %p164_p6 = scmp.lt.u32.totalorder %s160_s30, %s240_s2 }
  0x19   :  { %p166_p7 = pnand %p164_p6, %p161_p5 }
  0x1b   :  { %169 = shalt.err (!%p166_p7)
}
  0x1c   :  { %s174_s7 = smov 32   ;;  %s175_s8 = smov 2  }
  0x1d   :  { %139 = dma.vmem_to_hbm [thread:$0]  %s134_s27, 256, %s240_s2, [#allocation3], %s174_s7, %s174_s7, %s175_s8  }
  0x1e   :  { %170 = dma.done.wait [#allocation3], 256  }
  0x1f   :  { %171 = vsyncadd [#allocation3], 4294967040 }
  0x20   :  { %143 = vsyncpa [#allocation3], 1 }

</bundles_post_ra>
